<compile_context>
chip_gen: v7x
topology: tpu7x:2x2x1
jax: 0.10.0
libtpu: 0.0.40
codegen_flags: <defaults>
</compile_context>

<pallas_src>
import jax
import jax.numpy as jnp
from jax.experimental import pallas as pl
from jax.experimental.pallas import tpu as pltpu


def grad_loss_kernel(inpt_ref, tar_ref, out_ref, acc_ref):
    n = pl.program_id(1)

    @pl.when(n == 0)
    def _():
        acc_ref[...] = jnp.zeros_like(acc_ref)

    # Channel-SUM of (tar - inpt); the 1/C of the channel mean is folded into
    # the wrapper's final normalizer.  Cast to f32 after load (bf16-safe).
    d = jnp.sum(
        tar_ref[...].astype(jnp.float32) - inpt_ref[...].astype(jnp.float32),
        axis=1,
    )  # (Nb, H, W)

    _, H, W = d.shape
    left = d[:, 1:H - 1, 1:W - 3]
    mid = d[:, 1:H - 1, 2:W - 2]
    right = d[:, 1:H - 1, 3:W - 1]
    rowdiff = left - right                 # (Nb, H-2, W-4)
    rowsum = left + 2.0 * mid + right      # (Nb, H-2, W-4)
    # fx = [[1,0,-1],[2,0,-2],[1,0,-1]] (cross-correlation, as torch conv2d)
    gx = rowdiff[:, :-2, :] + 2.0 * rowdiff[:, 1:-1, :] + rowdiff[:, 2:, :]
    # fy = [[1,2,1],[0,0,0],[-1,-2,-1]]
    gy = rowsum[:, :-2, :] - rowsum[:, 2:, :]

    s = jnp.sum(jnp.abs(gy) + jnp.abs(gx))
    acc_ref[...] += s.reshape(1, 1, 1)

    @pl.when(n == pl.num_programs(1) - 1)
    def _():
        out_ref[...] = acc_ref[...]


def _pick_block_batch(N, C, H, W, itemsize, budget_bytes=32 * 1024 * 1024):
    """Largest divisor of N whose per-step block (double-buffered inputs +
    f32 temporaries) fits the VMEM budget."""
    per_sample = 2 * 2 * C * H * W * itemsize + 8 * H * W * 4
    nb = int(max(1, min(N, budget_bytes // max(per_sample, 1))))
    while N % nb:
        nb -= 1
    return nb


def grad_loss(inpt, tar):
    """Pallas implementation of GradLoss.forward(inpt, tar) -> scalar."""
    N, C, H, W = inpt.shape
    assert tar.shape == inpt.shape
    assert H >= 5 and W >= 5, "GradLoss needs H, W >= 5 (the [2:-2, 2:-2] crop)"

    itemsize = jnp.dtype(inpt.dtype).itemsize
    nb = _pick_block_batch(N, C, H, W, itemsize)
    g = N // nb
    n_par = 2 if (g >= 2 and g % 2 == 0) else 1   # megacore split on v7x
    steps = g // n_par

    partials = pl.pallas_call(
        grad_loss_kernel,
        out_shape=jax.ShapeDtypeStruct((n_par, 1, 1), jnp.float32),
        grid_spec=pltpu.PrefetchScalarGridSpec(
            num_scalar_prefetch=0,
            grid=(n_par, steps),
            in_specs=[
                pl.BlockSpec((nb, C, H, W), lambda c, n: (c * steps + n, 0, 0, 0)),
                pl.BlockSpec((nb, C, H, W), lambda c, n: (c * steps + n, 0, 0, 0)),
            ],
            out_specs=pl.BlockSpec((1, 1, 1), lambda c, n: (c, 0, 0)),
            scratch_shapes=[pltpu.VMEM((1, 1, 1), jnp.float32)],
        ),
        compiler_params=pltpu.CompilerParams(
            dimension_semantics=("parallel", "arbitrary"),
            vmem_limit_bytes=40 * 1024 * 1024,
        ),
    )(inpt, tar)

    # torch.sum(torch.mean(|.|)) == mean over all 2*N*(H-4)*(W-4) gradient
    # elements; the in-kernel channel SUM (not mean) contributes the extra C.
    count = 2 * N * (H - 4) * (W - 4) * C
    return (jnp.sum(partials) / count).astype(jnp.float32)


# ----------------------- pure-JAX reference (direct Sobel) -----------------------
def _sobel_cropped_ref(a):
    """a: (..., H, W). Returns (grad_y, grad_x) on the [2:-2, 2:-2] crop."""
    H, W = a.shape[-2], a.shape[-1]
    tl = a[..., 1:H - 3, 1:W - 3]
    tc = a[..., 1:H - 3, 2:W - 2]
    tr = a[..., 1:H - 3, 3:W - 1]
    ml = a[..., 2:H - 2, 1:W - 3]
    mr = a[..., 2:H - 2, 3:W - 1]
    bl = a[..., 3:H - 1, 1:W - 3]
    bc = a[..., 3:H - 1, 2:W - 2]
    br = a[..., 3:H - 1, 3:W - 1]
    gx = (tl - tr) + 2.0 * (ml - mr) + (bl - br)
    gy = (tl + 2.0 * tc + tr) - (bl + 2.0 * bc + br)
    return gy, gx


def grad_loss_ref(inpt, tar):
    mi = jnp.mean(inpt.astype(jnp.float32), axis=1)
    mt = jnp.mean(tar.astype(jnp.float32), axis=1)
    gy_i, gx_i = _sobel_cropped_ref(mi)
    gy_t, gx_t = _sobel_cropped_ref(mt)
    diffs = jnp.concatenate(
        [jnp.abs(gy_t - gy_i).reshape(-1), jnp.abs(gx_t - gx_i).reshape(-1)]
    )
    return jnp.mean(diffs)


if __name__ == "__main__":
    key = jax.random.PRNGKey(0)
    k1, k2 = jax.random.split(key)
    N, C, H, W = 2, 4, 16, 16
    inpt = jax.random.normal(k1, (N, C, H, W), dtype=jnp.float32)
    tar = jax.random.normal(k2, (N, C, H, W), dtype=jnp.float32)

    loss = grad_loss(inpt, tar)
    jax.block_until_ready(loss)

    ref = grad_loss_ref(inpt, tar)
    assert jnp.allclose(loss, ref, rtol=1e-4, atol=1e-5), (float(loss), float(ref))
    print("KERNEL_OK")
</pallas_src>

<mosaic_0001>
module attributes {stable_mosaic.version = 11 : i64} {
  func.func @grad_loss_kernel(%arg0: i32, %arg1: i32, %arg2: memref<2x4x16x16xf32, #tpu.memory_space<vmem>>, %arg3: memref<2x4x16x16xf32, #tpu.memory_space<vmem>>, %arg4: memref<1x1x1xf32, #tpu.memory_space<vmem>>, %arg5: memref<1x1x1xf32, #tpu.memory_space<vmem>>) attributes {dimension_semantics = [#tpu.dimension_semantics<parallel>, #tpu.dimension_semantics<arbitrary>], iteration_bounds = array<i64: 1, 1>, scalar_prefetch = 0 : i64, scratch_operands = 1 : i64, tpu.core_type = #tpu.core_type<tc>, window_params = [{transform_indices = @transform_0, window_bounds = array<i64: 2, 4, 16, 16>}, {transform_indices = @transform_1, window_bounds = array<i64: 2, 4, 16, 16>}, {transform_indices = @transform_2, window_bounds = array<i64: 1, 1, 1>}]} {
    %c0_i32 = arith.constant 0 : i32
    %0 = arith.cmpi eq, %arg1, %c0_i32 : i32
    %1 = arith.extui %0 : i1 to i32
    %c0_i32_0 = arith.constant 0 : i32
    %2 = arith.cmpi ne, %1, %c0_i32_0 : i32
    scf.if %2 {
      %cst_19 = arith.constant 0.000000e+00 : f32
      %39 = vector.broadcast %cst_19 : f32 to vector<1x1x1xf32>
      %c0_20 = arith.constant 0 : index
      %c0_21 = arith.constant 0 : index
      %c0_22 = arith.constant 0 : index
      %40 = vector.load %arg5[%c0_20, %c0_21, %c0_22] : memref<1x1x1xf32, #tpu.memory_space<vmem>>, vector<1x1x1xf32>
      tpu.vector_store %arg5[%c0_20, %c0_21, %c0_22], %39 {strides = array<i32>} : memref<1x1x1xf32, #tpu.memory_space<vmem>>, vector<1x1x1xf32>,
    } else {
    }
    %c0 = arith.constant 0 : index
    %c0_1 = arith.constant 0 : index
    %c0_2 = arith.constant 0 : index
    %c0_3 = arith.constant 0 : index
    %3 = vector.load %arg3[%c0, %c0_1, %c0_2, %c0_3] : memref<2x4x16x16xf32, #tpu.memory_space<vmem>>, vector<2x4x16x16xf32>
    %c0_4 = arith.constant 0 : index
    %c0_5 = arith.constant 0 : index
    %c0_6 = arith.constant 0 : index
    %c0_7 = arith.constant 0 : index
    %4 = vector.load %arg2[%c0_4, %c0_5, %c0_6, %c0_7] : memref<2x4x16x16xf32, #tpu.memory_space<vmem>>, vector<2x4x16x16xf32>
    %5 = arith.subf %3, %4 : vector<2x4x16x16xf32>
    %cst = arith.constant dense<0.000000e+00> : vector<2x16x16xf32>
    %6 = vector.multi_reduction <add>, %5, %cst [1] : vector<2x4x16x16xf32> to vector<2x16x16xf32>
    %7 = vector.extract_strided_slice %6 {offsets = [0, 1, 1], sizes = [2, 14, 12], strides = [1, 1, 1]} : vector<2x16x16xf32> to vector<2x14x12xf32>
    %8 = vector.extract_strided_slice %6 {offsets = [0, 1, 2], sizes = [2, 14, 12], strides = [1, 1, 1]} : vector<2x16x16xf32> to vector<2x14x12xf32>
    %9 = vector.extract_strided_slice %6 {offsets = [0, 1, 3], sizes = [2, 14, 12], strides = [1, 1, 1]} : vector<2x16x16xf32> to vector<2x14x12xf32>
    %10 = arith.subf %7, %9 : vector<2x14x12xf32>
    %cst_8 = arith.constant 2.000000e+00 : f32
    %11 = vector.broadcast %cst_8 : f32 to vector<2x14x12xf32>
    %12 = arith.mulf %11, %8 : vector<2x14x12xf32>
    %13 = arith.addf %7, %12 : vector<2x14x12xf32>
    %14 = arith.addf %13, %9 : vector<2x14x12xf32>
    %15 = vector.extract_strided_slice %10 {offsets = [0, 0, 0], sizes = [2, 12, 12], strides = [1, 1, 1]} : vector<2x14x12xf32> to vector<2x12x12xf32>
    %16 = vector.extract_strided_slice %10 {offsets = [0, 1, 0], sizes = [2, 12, 12], strides = [1, 1, 1]} : vector<2x14x12xf32> to vector<2x12x12xf32>
    %cst_9 = arith.constant 2.000000e+00 : f32
    %17 = vector.broadcast %cst_9 : f32 to vector<2x12x12xf32>
    %18 = arith.mulf %17, %16 : vector<2x12x12xf32>
    %19 = arith.addf %15, %18 : vector<2x12x12xf32>
    %20 = vector.extract_strided_slice %10 {offsets = [0, 2, 0], sizes = [2, 12, 12], strides = [1, 1, 1]} : vector<2x14x12xf32> to vector<2x12x12xf32>
    %21 = arith.addf %19, %20 : vector<2x12x12xf32>
    %22 = vector.extract_strided_slice %14 {offsets = [0, 0, 0], sizes = [2, 12, 12], strides = [1, 1, 1]} : vector<2x14x12xf32> to vector<2x12x12xf32>
    %23 = vector.extract_strided_slice %14 {offsets = [0, 2, 0], sizes = [2, 12, 12], strides = [1, 1, 1]} : vector<2x14x12xf32> to vector<2x12x12xf32>
    %24 = arith.subf %22, %23 : vector<2x12x12xf32>
    %25 = math.absf %24 : vector<2x12x12xf32>
    %26 = math.absf %21 : vector<2x12x12xf32>
    %27 = arith.addf %25, %26 : vector<2x12x12xf32>
    %28 = vector.shape_cast %27 : vector<2x12x12xf32> to vector<1x2x12x12xf32>
    %cst_10 = arith.constant dense<0.000000e+00> : vector<1xf32>
    %29 = vector.multi_reduction <add>, %28, %cst_10 [1, 2, 3] : vector<1x2x12x12xf32> to vector<1xf32>
    %30 = vector.shape_cast %29 : vector<1xf32> to vector<1x1x1x1xf32>
    %31 = vector.extract %30[0, 0, 0, 0] : f32 from vector<1x1x1x1xf32>
    %c0_11 = arith.constant 0 : index
    %c0_12 = arith.constant 0 : index
    %c0_13 = arith.constant 0 : index
    %32 = vector.load %arg5[%c0_11, %c0_12, %c0_13] : memref<1x1x1xf32, #tpu.memory_space<vmem>>, vector<1x1x1xf32>
    %33 = vector.broadcast %31 : f32 to vector<1x1x1xf32>
    %34 = arith.addf %32, %33 : vector<1x1x1xf32>
    %c0_14 = arith.constant 0 : index
    %c0_15 = arith.constant 0 : index
    %c0_16 = arith.constant 0 : index
    %35 = vector.load %arg5[%c0_14, %c0_15, %c0_16] : memref<1x1x1xf32, #tpu.memory_space<vmem>>, vector<1x1x1xf32>
    tpu.vector_store %arg5[%c0_14, %c0_15, %c0_16], %34 {strides = array<i32>} : memref<1x1x1xf32, #tpu.memory_space<vmem>>, vector<1x1x1xf32>,
    %c0_i32_17 = arith.constant 0 : i32
    %36 = arith.cmpi eq, %arg1, %c0_i32_17 : i32
    %37 = arith.extui %36 : i1 to i32
    %c0_i32_18 = arith.constant 0 : i32
    %38 = arith.cmpi ne, %37, %c0_i32_18 : i32
    scf.if %38 {
      %c0_19 = arith.constant 0 : index
      %c0_20 = arith.constant 0 : index
      %c0_21 = arith.constant 0 : index
      %39 = vector.load %arg5[%c0_19, %c0_20, %c0_21] : memref<1x1x1xf32, #tpu.memory_space<vmem>>, vector<1x1x1xf32>
      %c0_22 = arith.constant 0 : index
      %c0_23 = arith.constant 0 : index
      %c0_24 = arith.constant 0 : index
      %40 = vector.load %arg4[%c0_22, %c0_23, %c0_24] : memref<1x1x1xf32, #tpu.memory_space<vmem>>, vector<1x1x1xf32>
      tpu.vector_store %arg4[%c0_22, %c0_23, %c0_24], %39 {strides = array<i32>} : memref<1x1x1xf32, #tpu.memory_space<vmem>>, vector<1x1x1xf32>,
    } else {
    }
    return
  }
  func.func @transform_0(%arg0: i32, %arg1: i32) -> (i32, i32, i32, i32) {
    %c1_i32 = arith.constant 1 : i32
    %0 = arith.muli %arg0, %c1_i32 : i32
    %1 = arith.addi %0, %arg1 : i32
    %c0_i32 = arith.constant 0 : i32
    %c0_i32_0 = arith.constant 0 : i32
    %c0_i32_1 = arith.constant 0 : i32
    %c0_i32_2 = arith.constant 0 : i32
    return %1, %c0_i32, %c0_i32_0, %c0_i32_1 : i32, i32, i32, i32
  }
  func.func @transform_1(%arg0: i32, %arg1: i32) -> (i32, i32, i32, i32) {
    %c1_i32 = arith.constant 1 : i32
    %0 = arith.muli %arg0, %c1_i32 : i32
    %1 = arith.addi %0, %arg1 : i32
    %c0_i32 = arith.constant 0 : i32
    %c0_i32_0 = arith.constant 0 : i32
    %c0_i32_1 = arith.constant 0 : i32
    %c0_i32_2 = arith.constant 0 : i32
    return %1, %c0_i32, %c0_i32_0, %c0_i32_1 : i32, i32, i32, i32
  }
  func.func @transform_2(%arg0: i32, %arg1: i32) -> (i32, i32, i32) {
    %c0_i32 = arith.constant 0 : i32
    %c0_i32_0 = arith.constant 0 : i32
    %c0_i32_1 = arith.constant 0 : i32
    return %arg0, %c0_i32, %c0_i32_0 : i32, i32, i32
  }
}

</mosaic_0001>

<bundles_post_ra>
// kernel: tpu_custom_call.1
= control target key start
LH: loop header
LB: loop body
LE: loop exit
PB: predicated region body
PF: predicated region fallthrough
CT: control target
= control target key end

     0   :  { %7 = vsyncpa [#allocation4], 0  ;;  %s505_s0 = inlined_call_operand.hbm [shape: f32[2,4,16,16], index: 0, kind: input, shape index: {}]   ;;  %s506_s1 = inlined_call_operand.hbm [shape: f32[2,4,16,16], index: 1, kind: input, shape index: {}]   ;;  %s507_s2 = inlined_call_operand.hbm [shape: f32[1,1,1], index: 2, kind: output, shape index: {}]  }
   0x1   :  { %8 = vsyncpa [#allocation7], 0 }
   0x2   :  { %9 = vsyncpa [#allocation5], 0  ;;  %s405_s9 = smov [#allocation3]   ;;  %s333_s13 = scalar_lea.hbm %s505_s0, 2048 }
   0x3   :  { %s20_s10 = sshll.u32 %s405_s9, 4  ;;  %p334_p0 = scmp.ne.s32.totalorder %s505_s0, %s333_s13  ;;  %s21_s10 = int_to_ptr.vmem [resolvable:$true] %s20_s10 }
   0x4   :  { %p337_p1 = scmp.lt.u32.totalorder %s333_s13, %s505_s0 }
   0x6   :  { %p339_p2 = pnand %p337_p1, %p334_p0 }
   0x8   :  { %342 = shalt.err (!%p339_p2)
}
   0x9   :  { %s343_s18 = scalar_lea.vmem %s21_s10, 2048  ;;  %p348_p4 = scmp.lt.s32.totalorder %s21_s10, %s21_s10 }
   0xa   :  { %p344_p3 = scmp.ne.s32.totalorder %s21_s10, %s343_s18  ;;  %p349_p5 = scmp.lt.s32.totalorder %s343_s18, %s343_s18 }
   0xc   :  { %p350_p6 = por %p349_p5, %p348_p4 }
   0xe   :  { %p351_p7 = pnand %p350_p6, %p344_p3 }
  0x10   :  { %354 = shalt.err (!%p351_p7)
}
  0x11   :  { %s406_s19 = smov 128   ;;  %s407_s20 = smov 8  }
  0x12   :  { %26 = dma.hbm_to_vmem [thread:$0]  %s505_s0, 2048, %s21_s10, [#allocation4], %s406_s19, %s406_s19, %s407_s20  }
  0x13   :  { %s408_s23 = smov [#allocation6]   ;;  %s355_s27 = scalar_lea.hbm %s506_s1, 2048 }
  0x14   :  { %s37_s24 = sshll.u32 %s408_s23, 4  ;;  %p356_p8 = scmp.ne.s32.totalorder %s506_s1, %s355_s27  ;;  %s38_s24 = int_to_ptr.vmem [resolvable:$true] %s37_s24 }
  0x15   :  { %p359_p9 = scmp.lt.u32.totalorder %s355_s27, %s506_s1 }
  0x17   :  { %p361_p10 = pnand %p359_p9, %p356_p8 }
  0x19   :  { %364 = shalt.err (!%p361_p10)
}
  0x1a   :  { %s365_s4 = scalar_lea.vmem %s38_s24, 2048  ;;  %p370_p12 = scmp.lt.s32.totalorder %s38_s24, %s38_s24 }
  0x1b   :  { %p366_p11 = scmp.ne.s32.totalorder %s38_s24, %s365_s4  ;;  %p371_p13 = scmp.lt.s32.totalorder %s365_s4, %s365_s4 }
  0x1d   :  { %p372_p0 = por %p371_p13, %p370_p12 }
  0x1f   :  { %p373_p1 = pnand %p372_p0, %p366_p11 }
  0x21   :  { %376 = shalt.err (!%p373_p1)
}
  0x22   :  { %43 = dma.hbm_to_vmem [thread:$0]  %s506_s1, 2048, %s38_s24, [#allocation7], %s406_s19, %s406_s19, %s407_s20  }
  0x23   :  { %399 = dma.done.wait [#allocation4], 2048  }
  0x24   :  { %400 = vsyncadd [#allocation4], 4294965248 }
  0x25   :  { %401 = dma.done.wait [#allocation7], 2048  }
  0x26   :  { %402 = vsyncadd [#allocation7], 4294965248  ;;  %v68_v0 = vld [vmem:[#allocation6 + $0x40] sm:$0xff]  ;;  %v70_v1 = vld [vmem:[#allocation6 + $0x50] sm:$0xff]  ;;  %vm108_vm0 = vcmask 130048   ;;  %s409_s1 = smov 126  }
  0x27   :  { %v72_v2 = vld [vmem:[#allocation6 + $0x60] sm:$0xff]  ;;  %v74_v3 = vld [vmem:[#allocation6 + $0x70] sm:$0xff]  ;;  %v69_v25 = vld [vmem:[#allocation6 + $0x48] sm:$0xff]  ;;  %s410_s6 = smov 127   ;;  %vm193_vm1 = vcmask 1046528   ;;  %vm212_vm2 = vcmask 1045504  }
  0x28   :  { %v84_v4 = vld [vmem:[#allocation3 + $0x40] sm:$0xff]  ;;  %v86_v5 = vld [vmem:[#allocation3 + $0x50] sm:$0xff]  ;;  %v71_v26 = vld [vmem:[#allocation6 + $0x58] sm:$0xff]  ;;  %vm279_vm3 = vcmask 97280   ;;  %vm281_vm4 = vcmask 93184   ;;  %vm58_vm5 = vcmask 0  }
  0x29   :  { %v88_v6 = vld [vmem:[#allocation3 + $0x60] sm:$0xff]  ;;  %v90_v7 = vld [vmem:[#allocation3 + $0x70] sm:$0xff]  ;;  %v100_v8 = vsub.f32 %v68_v0, %v84_v4  ;;  %v102_v9 = vsub.f32 %v70_v1, %v86_v5  ;;  %v73_v31 = vld [vmem:[#allocation6 + $0x68] sm:$0xff]  ;;  %s412_s8 = smov [#allocation8]  }
  0x2a   :  { %v60_v10 = vld [vmem:[#allocation6] sm:$0xff]  ;;  %v104_v11 = vsub.f32 %v72_v2, %v88_v6  ;;  %v106_v12 = vsub.f32 %v74_v3, %v90_v7  ;;  %v62_v13 = vld [vmem:[#allocation6 + $0x10] sm:$0xff]  ;;  %v75_v32 = vld [vmem:[#allocation6 + $0x78] sm:$0xff]  ;;  %s313_s9 = sshll.u32 %s412_s8, 4  ;;  %s314_s9 = int_to_ptr.vmem [resolvable:$true] %s313_s9 }
  0x2b   :  { %v64_v14 = vld [vmem:[#allocation6 + $0x20] sm:$0xff]  ;;  %v66_v15 = vld [vmem:[#allocation6 + $0x30] sm:$0xff]  ;;  %v123_v16 = vsel %vm108_vm0, %v100_v8, 0.0  ;;  %v124_v17 = vsel %vm108_vm0, %v102_v9, 0.0  ;;  %v85_v33 = vld [vmem:[#allocation3 + $0x48] sm:$0xff]  ;;  %s377_s10 = scalar_lea.vmem %s314_s9, 16  ;;  %p382_p3 = scmp.lt.s32.totalorder %s314_s9, %s314_s9 }
  0x2c   :  { %v76_v18 = vld [vmem:[#allocation3] sm:$0xff]  ;;  %v78_v19 = vld [vmem:[#allocation3 + $0x10] sm:$0xff]  ;;  %v125_v21 = vadd.f32 %v124_v17, %v123_v16  ;;  %v126_v22 = vsel %vm108_vm0, %v104_v11, 0.0  ;;  %v128_v27 = vsel %vm108_vm0, %v106_v12, 0.0  ;;  %v87_v36 = vld [vmem:[#allocation3 + $0x58] sm:$0xff]  ;;  %v101_v39 = vsub.f32 %v69_v25, %v85_v33  ;;  %p378_p2 = scmp.ne.s32.totalorder %s314_s9, %s377_s10  ;;  %s381_s11 = scalar_lea.vmem %s314_s9, 32 }
  0x2d   :  { %v80_v20 = vld [vmem:[#allocation3 + $0x20] sm:$0xff]  ;;  %v82_v23 = vld [vmem:[#allocation3 + $0x30] sm:$0xff]  ;;  %v92_v24 = vsub.f32 %v60_v10, %v76_v18  ;;  %v94_v28 = vsub.f32 %v62_v13, %v78_v19  ;;  %v89_v37 = vld [vmem:[#allocation3 + $0x68] sm:$0xff]  ;;  %v103_v43 = vsub.f32 %v71_v26, %v87_v36  ;;  %p383_p4 = scmp.lt.s32.totalorder %s381_s11, %s377_s10 }
  0x2e   :  { %v96_v29 = vsub.f32 %v64_v14, %v80_v20  ;;  %v98_v30 = vsub.f32 %v66_v15, %v82_v23  ;;  %v127_v34 = vadd.f32 %v126_v22, %v125_v21  ;;  %v91_v38 = vld [vmem:[#allocation3 + $0x78] sm:$0xff]  ;;  %v61_v44 = vld [vmem:[#allocation6 + $0x8] sm:$0xff]  ;;  %v105_v49 = vsub.f32 %v73_v31, %v89_v37 }
  0x2f   :  { %v109_v35 = vsel %vm108_vm0, %v92_v24, 0.0  ;;  %v110_v40 = vsel %vm108_vm0, %v94_v28, 0.0  ;;  %v63_v45 = vld [vmem:[#allocation6 + $0x18] sm:$0xff]  ;;  %v65_v46 = vld [vmem:[#allocation6 + $0x28] sm:$0xff]  ;;  %v107_v50 = vsub.f32 %v75_v32, %v91_v38  ;;  %v130_v54 = vsel %vm108_vm0, %v101_v39, 0.0  ;;  %p384_p5 = por %p383_p4, %p382_p3 }
  0x30   :  { %v112_v41 = vsel %vm108_vm0, %v96_v29, 0.0  ;;  %v114_v42 = vsel %vm108_vm0, %v98_v30, 0.0  ;;  %v460_v47 = vadd.f32 %v128_v27, %v127_v34  ;;  %v111_v48 = vadd.f32 %v110_v40, %v109_v35  ;;  %v67_v51 = vld [vmem:[#allocation6 + $0x38] sm:$0xff]  ;;  %v77_v52 = vld [vmem:[#allocation3 + $0x8] sm:$0xff] }
  0x31   :  { %v79_v53 = vld [vmem:[#allocation3 + $0x18] sm:$0xff]  ;;  %v131_v55 = vsel %vm108_vm0, %v103_v43, 0.0  ;;  %v81_v56 = vld [vmem:[#allocation3 + $0x28] sm:$0xff]  ;;  %v93_v58 = vsub.f32 %v61_v44, %v77_v52  ;;  %v133_v62 = vsel %vm108_vm0, %v105_v49, 0.0  ;;  %v135_v63 = vsel %vm108_vm0, %v107_v50, 0.0  ;;  %p385_p6 = pnand %p384_p5, %p378_p2 }
  0x32   :  { %v83_v57 = vld [vmem:[#allocation3 + $0x38] sm:$0xff]  ;;  %v95_v59 = vsub.f32 %v63_v45, %v79_v53  ;;  %145 = vrot.lane.b32.xlu1 %v460_v47, %s409_s1  ;;  %v113_v60 = vadd.f32 %v112_v41, %v111_v48  ;;  %v132_v61 = vadd.f32 %v131_v55, %v130_v54  ;;  %v97_v0 = vsub.f32 %v65_v46, %v81_v56 }
  0x33   :  { %v99_v1 = vsub.f32 %v67_v51, %v83_v57  ;;  %v116_v2 = vsel %vm108_vm0, %v93_v58, 0.0  ;;  %v159_v15 = vmul.f32 2.0, %v460_v47 }
  0x34   :  { %v117_v3 = vsel %vm108_vm0, %v95_v59, 0.0  ;;  %v115_v4 = vadd.f32 %v114_v42, %v113_v60  ;;  %v134_v5 = vadd.f32 %v133_v62, %v132_v61  ;;  %v119_v7 = vsel %vm108_vm0, %v97_v0, 0.0 }
  0x35   :  { %v118_v6 = vadd.f32 %v117_v3, %v116_v2  ;;  %v121_v8 = vsel %vm108_vm0, %v99_v1, 0.0 }
  0x36   :  { %141 = vrot.lane.b32.xlu0 %v115_v4, %s409_s1  ;;  %v136_v9 = vadd.f32 %v135_v63, %v134_v5  ;;  %v157_v13 = vmul.f32 2.0, %v115_v4 }
  0x37   :  { %v120_v10 = vadd.f32 %v119_v7, %v118_v6 }
  0x38   :  { %147 = vrot.lane.b32.xlu1 %v136_v9, %s409_s1  ;;  %v160_v14 = vmul.f32 2.0, %v136_v9 }
  0x39   :  { %v122_v11 = vadd.f32 %v121_v8, %v120_v10 }
  0x3b   :  { %143 = vrot.lane.b32.xlu0 %v122_v11, %s409_s1  ;;  %v158_v12 = vmul.f32 2.0, %v122_v11 }
  0x3d   :  { %167 = vrot.lane.b32.xlu1 %v158_v12, %s410_s6 }
  0x3f   :  { %165 = vrot.lane.b32.xlu0 %v157_v13, %s410_s6 }
  0x41   :  { %171 = vrot.lane.b32.xlu1 %v160_v14, %s410_s6 }
  0x43   :  { %169 = vrot.lane.b32.xlu0 %v159_v15, %s410_s6 }
  0xa4   :  { %v146_v16 = vpop.permute.xlu1 %145 }
  0xa5   :  { %v155_v17 = vsub.f32 %v460_v47, %v146_v16 }
  0xa7   :  { %v187_v22 = vmul.f32 2.0, %v155_v17  ;;  %v216_v46 = vrot.slane %v155_v17, 2 }
  0xa8   :  { %v142_v18 = vpop.permute.xlu0 %141 }
  0xa9   :  { %v153_v19 = vsub.f32 %v115_v4, %v142_v18  ;;  %v197_v31 = vrot.slane %v187_v22, 1 }
  0xaa   :  { %v148_v20 = vpop.permute.xlu1 %147 }
  0xab   :  { %v156_v21 = vsub.f32 %v136_v9, %v148_v20  ;;  %v185_v26 = vmul.f32 2.0, %v153_v19  ;;  %v213_v38 = vrot.slane %v153_v19, 2 }
  0xad   :  { %v144_v23 = vpop.permute.xlu0 %143  ;;  %v188_v24 = vmul.f32 2.0, %v156_v21  ;;  %v194_v37 = vrot.slane %v185_v26, 1  ;;  %v217_v48 = vrot.slane %v156_v21, 2 }
  0xae   :  { %v154_v25 = vsub.f32 %v122_v11, %v144_v23 }
  0xaf   :  { %v168_v27 = vpop.permute.xlu1 %167  ;;  %v198_v28 = vrot.slane %v188_v24, 1  ;;  %v218_v5 = vsel %vm212_vm2, %v216_v46, %v217_v48 }
  0xb0   :  { %v186_v29 = vmul.f32 2.0, %v154_v25  ;;  %v178_v30 = vadd.f32 %v168_v27, %v122_v11  ;;  %v214_v32 = vrot.slane %v154_v25, 2 }
  0xb1   :  { %v166_v33 = vpop.permute.xlu0 %165  ;;  %v207_v39 = vadd.f32 %v198_v28, %v156_v21  ;;  %v199_v41 = vsel %vm193_vm1, %v197_v31, %v198_v28 }
  0xb2   :  { %v195_v34 = vrot.slane %v186_v29, 1  ;;  %v182_v35 = vadd.f32 %v178_v30, %v144_v23  ;;  %v177_v36 = vadd.f32 %v166_v33, %v115_v4  ;;  %v215_v51 = vsel %vm212_vm2, %v213_v38, %v214_v32 }
  0xb3   :  { %v172_v40 = vpop.permute.xlu1 %171  ;;  %v206_v58 = vadd.f32 %v199_v41, %v155_v17  ;;  %v226_v59 = vadd.f32 %v217_v48, %v207_v39 }
  0xb4   :  { %v205_v42 = vadd.f32 %v195_v34, %v154_v25  ;;  %v232_v43 = vrot.slane %v182_v35, 2  ;;  %v181_v44 = vadd.f32 %v177_v36, %v142_v18  ;;  %v180_v45 = vadd.f32 %v172_v40, %v136_v9 }
  0xb5   :  { %v170_v49 = vpop.permute.xlu0 %169  ;;  %v196_v50 = vsel %vm193_vm1, %v194_v37, %v195_v34  ;;  %v252_v11 = vand.u32 2147483647, %v226_v59 }
  0xb6   :  { %v242_v52 = vsub.f32 %v182_v35, %v232_v43  ;;  %v231_v53 = vrot.slane %v181_v44, 2  ;;  %v184_v54 = vadd.f32 %v180_v45, %v148_v20  ;;  %v179_v55 = vadd.f32 %v170_v49, %v460_v47 }
  0xb7   :  { %v224_v56 = vadd.f32 %v214_v32, %v205_v42  ;;  %v204_v57 = vadd.f32 %v196_v50, %v153_v19  ;;  %v225_v47 = vadd.f32 %v218_v5, %v206_v58  ;;  %v411_v35 = vmov 0.0  }
  0xb8   :  { %v246_v60 = vand.u32 2147483647, %v242_v52  ;;  %v233_v61 = vsel %vm212_vm2, %v231_v53, %v232_v43  ;;  %v235_v62 = vrot.slane %v184_v54, 2  ;;  %v183_v63 = vadd.f32 %v179_v55, %v146_v16  ;;  %59 = vst.msk [vmem:[#allocation2] sm:$0x1] %vm58_vm5, %v411_v35 }
  0xb9   :  { %v241_v0 = vsub.f32 %v181_v44, %v233_v61  ;;  %v250_v1 = vand.u32 2147483647, %v224_v56  ;;  %v223_v2 = vadd.f32 %v215_v51, %v204_v57  ;;  %v251_v18 = vand.u32 2147483647, %v225_v47 }
  0xba   :  { %v244_v3 = vsub.f32 %v184_v54, %v235_v62  ;;  %v234_v4 = vrot.slane %v183_v63, 2 }
  0xbb   :  { %v245_v6 = vand.u32 2147483647, %v241_v0  ;;  %v254_v7 = vadd.f32 %v250_v1, %v246_v60  ;;  %v249_v8 = vand.u32 2147483647, %v223_v2 }
  0xbc   :  { %v248_v9 = vand.u32 2147483647, %v244_v3  ;;  %v236_v10 = vsel %vm212_vm2, %v234_v4, %v235_v62 }
  0xbd   :  { %v243_v12 = vsub.f32 %v183_v63, %v236_v10  ;;  %v262_v13 = vrot.slane %v254_v7, 1  ;;  %v253_v14 = vadd.f32 %v249_v8, %v245_v6 }
  0xbe   :  { %v256_v15 = vadd.f32 %v252_v11, %v248_v9 }
  0xbf   :  { %v247_v16 = vand.u32 2147483647, %v243_v12  ;;  %269 = vrot.lane.b32.xlu1 %v262_v13, %s410_s6  ;;  %v261_v17 = vrot.slane %v253_v14, 1  ;;  %v297_v43 = vld [vmem:[#allocation2] sm:$0x1] }
  0xc0   :  { %v265_v19 = vrot.slane %v256_v15, 1 }
  0xc1   :  { %v263_v20 = vsel %vm193_vm1, %v261_v17, %v262_v13  ;;  %v255_v21 = vadd.f32 %v251_v18, %v247_v16 }
  0xc2   :  { %267 = vrot.lane.b32.xlu0 %v263_v20, %s410_s6 }
  0xc3   :  { %273 = vrot.lane.b32.xlu1 %v265_v19, %s410_s6  ;;  %v264_v22 = vrot.slane %v255_v21, 1 }
  0xc5   :  { %v266_v23 = vsel %vm193_vm1, %v264_v22, %v265_v19 }
  0xc6   :  { %271 = vrot.lane.b32.xlu0 %v266_v23, %s410_s6 }
 0x131   :  { %v270_v24 = vpop.permute.xlu1 %269 }
 0x132   :  { %v282_v27 = vsel %vm281_vm4, %v270_v24, 0.0 }
 0x134   :  { %v268_v25 = vpop.permute.xlu0 %267 }
 0x135   :  { %v280_v26 = vsel %vm279_vm3, %v268_v25, 0.0  ;;  %v274_v29 = vpop.permute.xlu1 %273 }
 0x136   :  { %v283_v28 = vadd.f32 %v282_v27, %v280_v26  ;;  %v286_v33 = vsel %vm281_vm4, %v274_v29, 0.0 }
 0x138   :  { %v272_v30 = vpop.permute.xlu0 %271 }
 0x139   :  { %v284_v31 = vsel %vm279_vm3, %v272_v30, 0.0 }
 0x13a   :  { %v285_v32 = vadd.f32 %v284_v31, %v283_v28 }
 0x13c   :  { %v287_v34 = vadd.f32 %v286_v33, %v285_v32 }
 0x13e   :  { %288 = vadd.xlane.f32.xlu0 %v287_v34 }
 0x1cb   :  { %v289_v36 = vpop.xlane.xlu0 %288 }
 0x1cc   :  { %v290_v37 = vrot.slane %v289_v36, 4 }
 0x1ce   :  { %v291_v38 = vadd.f32 %v290_v37, %v289_v36 }
 0x1d0   :  { %v292_v39 = vrot.slane %v291_v38, 2 }
 0x1d2   :  { %v293_v40 = vadd.f32 %v292_v39, %v291_v38 }
 0x1d4   :  { %v294_v41 = vrot.slane %v293_v40, 1 }
 0x1d6   :  { %v295_v42 = vadd.f32 %v294_v41, %v293_v40 }
 0x1d8   :  { %323 = vpush %v295_v42 }
 0x209   :  { %s324_s7 = spop %323 }
 0x20a   :  { %v298_v44 = vstv %s324_s7 }
 0x20b   :  { %v299_v45 = vadd.f32 %v298_v44, %v297_v43 }
 0x20d   :  { %301 = vst.msk [vmem:[#allocation2] sm:$0x1] %vm58_vm5, %v299_v45 }
 0x214   :  { %v305_v46 = vld [vmem:[#allocation2] sm:$0x1] }
 0x215   :  { %306 = vst.msk [vmem:[#allocation8] sm:$0x1] %vm58_vm5, %v305_v46 }
 0x216   :  { %388 = shalt.err (!%p385_p6)
}
 0x217   :  { %s389_s14 = scalar_lea.hbm %s507_s2, 16 }
 0x218   :  { %p390_p7 = scmp.ne.s32.totalorder %s507_s2, %s389_s14  ;;  %p393_p8 = scmp.lt.u32.totalorder %s389_s14, %s507_s2 }
 0x21a   :  { %p395_p9 = pnand %p393_p8, %p390_p7 }
 0x21c   :  { %398 = shalt.err (!%p395_p9)
}
 0x21d   :  { %316 = dma.vmem_to_hbm [thread:$0]  %s314_s9, 16, %s507_s2, [#allocation5]  }
 0x21e   :  { %403 = dma.done.wait [#allocation5], 16  }
 0x21f   :  { %404 = vsyncadd [#allocation5], 4294967280 }
 0x220   :  { %320 = vsyncpa [#allocation4], 1 }
 0x221   :  { %321 = vsyncpa [#allocation7], 1 }
 0x222   :  { %322 = vsyncpa [#allocation5], 1 }

</bundles_post_ra>
